<compile_context>
chip_gen: v5e
topology: v5e:2x2
jax: 0.10.0
libtpu: 0.0.40
codegen_flags: <defaults>
</compile_context>

<pallas_src>
import functools

import jax
import jax.numpy as jnp
import numpy as np
from jax.experimental import pallas as pl
from jax.experimental.pallas import tpu as pltpu


def _conv_pool_stats_kernel(x_ref, wt_ref, b_ref, y_ref, sum_ref, sq_ref,
                            *, num_windows):
    # x_ref:   (nwin, Cin, TM)   -- M tile on lanes, channels on sublanes
    # wt_ref:  (Cout, Cin)       b_ref: (Cout, 1)
    # y_ref:   (Cout, TM)        sum_ref / sq_ref: (1, Cout, 1)
    wt = wt_ref[...]
    # 1x1 conv == matmul; fused with the 2x2 max-pool as an elementwise max
    # over the 4 window-position matmuls (valid: bias is per-channel const).
    y = jnp.dot(wt, x_ref[0], preferred_element_type=jnp.float32)
    for i in range(1, num_windows):
        y = jnp.maximum(
            y, jnp.dot(wt, x_ref[i], preferred_element_type=jnp.float32))
    y = y + b_ref[...]                     # conv bias, broadcast over lanes
    y_ref[...] = y
    # per-tile partial BN statistics (single sweep: sum and sum-of-squares)
    sum_ref[0] = jnp.sum(y, axis=-1, keepdims=True)
    sq_ref[0] = jnp.sum(y * y, axis=-1, keepdims=True)


def _bn_lrelu_kernel(y_ref, scale_ref, shift_ref, o_ref, *, neg_slope):
    # fused BN affine (precomputed scale/shift) + LeakyReLU, lane-dense store
    z = y_ref[...] * scale_ref[...] + shift_ref[...]
    o_ref[...] = jnp.where(z > 0, z, neg_slope * z)


def _pick_tile(m, target=2048):
    """Largest multiple-of-128 divisor of m that is <= target (else m)."""
    if m % 128 != 0:
        return m
    tm = 128
    c = 128
    while c <= min(m, target):
        if m % c == 0:
            tm = c
        c += 128
    return tm


def basic_block_au(x_nchw, conv_w, conv_b, bn_gamma, bn_beta,
                   *, pool=2, eps=1e-5, neg_slope=0.2):
    """x_nchw: (N, Cin, H, W) f32.  conv_w: (Cout, Cin, 1, 1).  Returns NCHW."""
    N, Cin, H, W = x_nchw.shape
    Cout = conv_w.shape[0]
    assert conv_w.shape[2:] == (1, 1), "only the default 1x1 conv is supported"
    Hp, Wp = H // pool, W // pool
    M = N * Hp * Wp
    nwin = pool * pool
    TM = _pick_tile(M)
    nt = M // TM

    # ---- glue: one relayout to the lane-dense (nwin, Cin, M) slab ----
    # TODO(synk): folding this 2x2-window gather into the kernel (manual
    # strided DMA from memory_space=pl.ANY) would remove this HBM pass.
    x6 = x_nchw[:, :, :Hp * pool, :Wp * pool].reshape(
        N, Cin, Hp, pool, Wp, pool)
    x3 = jnp.transpose(x6, (3, 5, 1, 0, 2, 4)).reshape(
        nwin, Cin, M).astype(jnp.float32)

    wt = conv_w.reshape(Cout, Cin).astype(jnp.float32)     # (Cout, Cin)
    b2 = conv_b.reshape(Cout, 1).astype(jnp.float32)

    cost1 = pl.CostEstimate(
        flops=2 * nwin * M * Cin * Cout + nwin * M * Cout,
        transcendentals=0,
        bytes_accessed=4 * (nwin * M * Cin + M * Cout + Cout * Cin
                            + Cout + 2 * nt * Cout))

    y, sums, sqs = pl.pallas_call(
        functools.partial(_conv_pool_stats_kernel, num_windows=nwin),
        out_shape=(
            jax.ShapeDtypeStruct((Cout, M), jnp.float32),
            jax.ShapeDtypeStruct((nt, Cout, 1), jnp.float32),
            jax.ShapeDtypeStruct((nt, Cout, 1), jnp.float32),
        ),
        grid_spec=pltpu.PrefetchScalarGridSpec(
            num_scalar_prefetch=0,
            grid=(nt,),
            in_specs=[
                pl.BlockSpec((nwin, Cin, TM), lambda i: (0, 0, i)),
                pl.BlockSpec((Cout, Cin), lambda i: (0, 0)),
                pl.BlockSpec((Cout, 1), lambda i: (0, 0)),
            ],
            out_specs=(
                pl.BlockSpec((Cout, TM), lambda i: (0, i)),
                pl.BlockSpec((1, Cout, 1), lambda i: (i, 0, 0)),
                pl.BlockSpec((1, Cout, 1), lambda i: (i, 0, 0)),
            ),
        ),
        compiler_params=pltpu.CompilerParams(
            dimension_semantics=("parallel",)),
        cost_estimate=cost1,
    )(x3, wt, b2)

    # ---- global train-mode BN stats from per-tile partials (tiny, plain JAX)
    m_f = jnp.float32(M)
    mean = jnp.sum(sums, axis=0) / m_f                            # (Cout, 1)
    var = jnp.maximum(jnp.sum(sqs, axis=0) / m_f - mean * mean, 0.0)
    inv = jax.lax.rsqrt(var + eps)
    scale = bn_gamma.reshape(Cout, 1).astype(jnp.float32) * inv   # (Cout, 1)
    shift = bn_beta.reshape(Cout, 1).astype(jnp.float32) - mean * scale

    cost2 = pl.CostEstimate(
        flops=4 * M * Cout,
        transcendentals=0,
        bytes_accessed=4 * (2 * M * Cout + 2 * Cout))

    out2 = pl.pallas_call(
        functools.partial(_bn_lrelu_kernel, neg_slope=neg_slope),
        out_shape=jax.ShapeDtypeStruct((Cout, M), jnp.float32),
        grid_spec=pltpu.PrefetchScalarGridSpec(
            num_scalar_prefetch=0,
            grid=(nt,),
            in_specs=[
                pl.BlockSpec((Cout, TM), lambda i: (0, i)),
                pl.BlockSpec((Cout, 1), lambda i: (0, 0)),
                pl.BlockSpec((Cout, 1), lambda i: (0, 0)),
            ],
            out_specs=pl.BlockSpec((Cout, TM), lambda i: (0, i)),
        ),
        compiler_params=pltpu.CompilerParams(
            dimension_semantics=("parallel",)),
        cost_estimate=cost2,
        input_output_aliases={0: 0},       # rewrite y in place (P8)
    )(y, scale, shift)

    # back to NCHW to match PyTorch's output convention
    return out2.reshape(Cout, N, Hp, Wp).transpose(1, 0, 2, 3)


def _reference(x_nchw, conv_w, conv_b, bn_gamma, bn_beta,
               *, pool=2, eps=1e-5, neg_slope=0.2):
    """Pure-JAX reference mirroring the PyTorch forward (train-mode BN)."""
    y = jax.lax.conv_general_dilated(
        x_nchw, conv_w, window_strides=(1, 1), padding="VALID",
        dimension_numbers=("NCHW", "OIHW", "NCHW"))
    y = y + conv_b[None, :, None, None]
    y = jax.lax.reduce_window(
        y, -jnp.inf, jax.lax.max,
        window_dimensions=(1, 1, pool, pool),
        window_strides=(1, 1, pool, pool), padding="VALID")
    mean = jnp.mean(y, axis=(0, 2, 3), keepdims=True)
    var = jnp.mean((y - mean) ** 2, axis=(0, 2, 3), keepdims=True)
    y = (y - mean) * jax.lax.rsqrt(var + eps)
    y = y * bn_gamma[None, :, None, None] + bn_beta[None, :, None, None]
    return jnp.where(y > 0, y, neg_slope * y)


if __name__ == "__main__":
    key = jax.random.PRNGKey(0)
    k_x, k_w, k_b, k_g, k_be = jax.random.split(key, 5)

    N, Cin, H, W = 2, 4, 16, 16
    Cout = 8

    x = jax.random.normal(k_x, (N, Cin, H, W), dtype=jnp.float32)
    conv_w = jax.random.normal(k_w, (Cout, Cin, 1, 1), dtype=jnp.float32) * 0.1
    conv_b = jax.random.normal(k_b, (Cout,), dtype=jnp.float32) * 0.1
    bn_gamma = 1.0 + 0.1 * jax.random.normal(k_g, (Cout,), dtype=jnp.float32)
    bn_beta = 0.1 * jax.random.normal(k_be, (Cout,), dtype=jnp.float32)

    fn = jax.jit(basic_block_au)
    out = jax.block_until_ready(fn(x, conv_w, conv_b, bn_gamma, bn_beta))
    ref = jax.block_until_ready(
        _reference(x, conv_w, conv_b, bn_gamma, bn_beta))

    assert out.shape == (N, Cout, H // 2, W // 2), out.shape
    assert np.allclose(np.asarray(out), np.asarray(ref), atol=1e-4, rtol=1e-4)
    print("KERNEL_OK")
</pallas_src>

<mosaic_0001>
module attributes {stable_mosaic.version = 11 : i64} {
  func.func @_bn_lrelu_kernel(%arg0: i32, %arg1: memref<8x128xf32, #tpu.memory_space<vmem>>, %arg2: memref<8x1xf32, #tpu.memory_space<vmem>>, %arg3: memref<8x1xf32, #tpu.memory_space<vmem>>, %arg4: memref<8x128xf32, #tpu.memory_space<vmem>>) attributes {dimension_semantics = [#tpu.dimension_semantics<parallel>], iteration_bounds = array<i64: 1>, scalar_prefetch = 0 : i64, scratch_operands = 0 : i64, tpu.core_type = #tpu.core_type<tc>, window_params = [{transform_indices = @transform_0, window_bounds = array<i64: 8, 128>}, {pipeline_mode = #tpu.pipeline_mode<synchronous>, transform_indices = @transform_1, window_bounds = array<i64: 8, 1>}, {pipeline_mode = #tpu.pipeline_mode<synchronous>, transform_indices = @transform_2, window_bounds = array<i64: 8, 1>}, {transform_indices = @transform_3, window_bounds = array<i64: 8, 128>}]} {
    %c0 = arith.constant 0 : index
    %c0_0 = arith.constant 0 : index
    %0 = vector.load %arg1[%c0, %c0_0] : memref<8x128xf32, #tpu.memory_space<vmem>>, vector<8x128xf32>
    %c0_1 = arith.constant 0 : index
    %c0_2 = arith.constant 0 : index
    %1 = vector.load %arg2[%c0_1, %c0_2] : memref<8x1xf32, #tpu.memory_space<vmem>>, vector<8x1xf32>
    %2 = vector.broadcast %1 : vector<8x1xf32> to vector<8x128xf32>
    %3 = arith.mulf %0, %2 : vector<8x128xf32>
    %c0_3 = arith.constant 0 : index
    %c0_4 = arith.constant 0 : index
    %4 = vector.load %arg3[%c0_3, %c0_4] : memref<8x1xf32, #tpu.memory_space<vmem>>, vector<8x1xf32>
    %5 = vector.broadcast %4 : vector<8x1xf32> to vector<8x128xf32>
    %6 = arith.addf %3, %5 : vector<8x128xf32>
    %cst = arith.constant 0.000000e+00 : f32
    %7 = vector.broadcast %cst : f32 to vector<8x128xf32>
    %8 = arith.cmpf ogt, %6, %7 : vector<8x128xf32>
    %cst_5 = arith.constant 2.000000e-01 : f32
    %9 = vector.broadcast %cst_5 : f32 to vector<8x128xf32>
    %10 = arith.mulf %9, %6 : vector<8x128xf32>
    %11 = arith.select %8, %6, %10 : vector<8x128xi1>, vector<8x128xf32>
    %c0_6 = arith.constant 0 : index
    %c0_7 = arith.constant 0 : index
    %12 = vector.load %arg4[%c0_6, %c0_7] : memref<8x128xf32, #tpu.memory_space<vmem>>, vector<8x128xf32>
    tpu.vector_store %arg4[%c0_6, %c0_7], %11 {strides = array<i32>} : memref<8x128xf32, #tpu.memory_space<vmem>>, vector<8x128xf32>,
    return
  }
  func.func @transform_0(%arg0: i32) -> (i32, i32) {
    %c0_i32 = arith.constant 0 : i32
    %c0_i32_0 = arith.constant 0 : i32
    return %c0_i32, %arg0 : i32, i32
  }
  func.func @transform_1(%arg0: i32) -> (i32, i32) {
    %c0_i32 = arith.constant 0 : i32
    %c0_i32_0 = arith.constant 0 : i32
    %c0_i32_1 = arith.constant 0 : i32
    return %c0_i32, %c0_i32_0 : i32, i32
  }
  func.func @transform_2(%arg0: i32) -> (i32, i32) {
    %c0_i32 = arith.constant 0 : i32
    %c0_i32_0 = arith.constant 0 : i32
    %c0_i32_1 = arith.constant 0 : i32
    return %c0_i32, %c0_i32_0 : i32, i32
  }
  func.func @transform_3(%arg0: i32) -> (i32, i32) {
    %c0_i32 = arith.constant 0 : i32
    %c0_i32_0 = arith.constant 0 : i32
    return %c0_i32, %arg0 : i32, i32
  }
}

module attributes {stable_mosaic.version = 11 : i64} {
  func.func @_conv_pool_stats_kernel(%arg0: i32, %arg1: memref<4x4x128xf32, #tpu.memory_space<vmem>>, %arg2: memref<8x4xf32, #tpu.memory_space<vmem>>, %arg3: memref<8x1xf32, #tpu.memory_space<vmem>>, %arg4: memref<8x128xf32, #tpu.memory_space<vmem>>, %arg5: memref<1x8x1xf32, #tpu.memory_space<vmem>>, %arg6: memref<1x8x1xf32, #tpu.memory_space<vmem>>) attributes {dimension_semantics = [#tpu.dimension_semantics<parallel>], iteration_bounds = array<i64: 1>, scalar_prefetch = 0 : i64, scratch_operands = 0 : i64, tpu.core_type = #tpu.core_type<tc>, window_params = [{transform_indices = @transform_0, window_bounds = array<i64: 4, 4, 128>}, {pipeline_mode = #tpu.pipeline_mode<synchronous>, transform_indices = @transform_1, window_bounds = array<i64: 8, 4>}, {pipeline_mode = #tpu.pipeline_mode<synchronous>, transform_indices = @transform_2, window_bounds = array<i64: 8, 1>}, {transform_indices = @transform_3, window_bounds = array<i64: 8, 128>}, {transform_indices = @transform_4, window_bounds = array<i64: 1, 8, 1>}, {transform_indices = @transform_5, window_bounds = array<i64: 1, 8, 1>}]} {
    %c0 = arith.constant 0 : index
    %c0_0 = arith.constant 0 : index
    %0 = vector.load %arg2[%c0, %c0_0] : memref<8x4xf32, #tpu.memory_space<vmem>>, vector<8x4xf32>
    %c0_1 = arith.constant 0 : index
    %c0_2 = arith.constant 0 : index
    %c0_3 = arith.constant 0 : index
    %1 = vector.load %arg1[%c0_1, %c0_2, %c0_3] : memref<4x4x128xf32, #tpu.memory_space<vmem>>, vector<1x4x128xf32>
    %2 = vector.shape_cast %1 : vector<1x4x128xf32> to vector<4x128xf32>
    %cst = arith.constant dense<0.000000e+00> : vector<8x128xf32>
    %3 = tpu.matmul %0, %2, %cst {dimension_numbers = #tpu.dot_dimension_numbers<[1], [0], [0], [1], [0, 0, 1, 1], [], []>} : vector<8x4xf32>, vector<4x128xf32>, vector<8x128xf32> -> vector<8x128xf32>
    %c1 = arith.constant 1 : index
    %c0_4 = arith.constant 0 : index
    %c0_5 = arith.constant 0 : index
    %4 = vector.load %arg1[%c1, %c0_4, %c0_5] : memref<4x4x128xf32, #tpu.memory_space<vmem>>, vector<1x4x128xf32>
    %5 = vector.shape_cast %4 : vector<1x4x128xf32> to vector<4x128xf32>
    %cst_6 = arith.constant dense<0.000000e+00> : vector<8x128xf32>
    %6 = tpu.matmul %0, %5, %cst_6 {dimension_numbers = #tpu.dot_dimension_numbers<[1], [0], [0], [1], [0, 0, 1, 1], [], []>} : vector<8x4xf32>, vector<4x128xf32>, vector<8x128xf32> -> vector<8x128xf32>
    %7 = arith.maximumf %3, %6 : vector<8x128xf32>
    %c2 = arith.constant 2 : index
    %c0_7 = arith.constant 0 : index
    %c0_8 = arith.constant 0 : index
    %8 = vector.load %arg1[%c2, %c0_7, %c0_8] : memref<4x4x128xf32, #tpu.memory_space<vmem>>, vector<1x4x128xf32>
    %9 = vector.shape_cast %8 : vector<1x4x128xf32> to vector<4x128xf32>
    %cst_9 = arith.constant dense<0.000000e+00> : vector<8x128xf32>
    %10 = tpu.matmul %0, %9, %cst_9 {dimension_numbers = #tpu.dot_dimension_numbers<[1], [0], [0], [1], [0, 0, 1, 1], [], []>} : vector<8x4xf32>, vector<4x128xf32>, vector<8x128xf32> -> vector<8x128xf32>
    %11 = arith.maximumf %7, %10 : vector<8x128xf32>
    %c3 = arith.constant 3 : index
    %c0_10 = arith.constant 0 : index
    %c0_11 = arith.constant 0 : index
    %12 = vector.load %arg1[%c3, %c0_10, %c0_11] : memref<4x4x128xf32, #tpu.memory_space<vmem>>, vector<1x4x128xf32>
    %13 = vector.shape_cast %12 : vector<1x4x128xf32> to vector<4x128xf32>
    %cst_12 = arith.constant dense<0.000000e+00> : vector<8x128xf32>
    %14 = tpu.matmul %0, %13, %cst_12 {dimension_numbers = #tpu.dot_dimension_numbers<[1], [0], [0], [1], [0, 0, 1, 1], [], []>} : vector<8x4xf32>, vector<4x128xf32>, vector<8x128xf32> -> vector<8x128xf32>
    %15 = arith.maximumf %11, %14 : vector<8x128xf32>
    %c0_13 = arith.constant 0 : index
    %c0_14 = arith.constant 0 : index
    %16 = vector.load %arg3[%c0_13, %c0_14] : memref<8x1xf32, #tpu.memory_space<vmem>>, vector<8x1xf32>
    %17 = vector.broadcast %16 : vector<8x1xf32> to vector<8x128xf32>
    %18 = arith.addf %15, %17 : vector<8x128xf32>
    %c0_15 = arith.constant 0 : index
    %c0_16 = arith.constant 0 : index
    %19 = vector.load %arg4[%c0_15, %c0_16] : memref<8x128xf32, #tpu.memory_space<vmem>>, vector<8x128xf32>
    tpu.vector_store %arg4[%c0_15, %c0_16], %18 {strides = array<i32>} : memref<8x128xf32, #tpu.memory_space<vmem>>, vector<8x128xf32>,
    %cst_17 = arith.constant dense<0.000000e+00> : vector<8xf32>
    %20 = vector.multi_reduction <add>, %18, %cst_17 [1] : vector<8x128xf32> to vector<8xf32>
    %21 = vector.shape_cast %20 : vector<8xf32> to vector<8x1xf32>
    %c0_18 = arith.constant 0 : index
    %c0_19 = arith.constant 0 : index
    %c0_20 = arith.constant 0 : index
    %22 = vector.load %arg5[%c0_18, %c0_19, %c0_20] : memref<1x8x1xf32, #tpu.memory_space<vmem>>, vector<1x8x1xf32>
    %23 = vector.shape_cast %22 : vector<1x8x1xf32> to vector<8x1xf32>
    %24 = vector.shape_cast %21 : vector<8x1xf32> to vector<1x8x1xf32>
    tpu.vector_store %arg5[%c0_18, %c0_19, %c0_20], %24 {strides = array<i32>} : memref<1x8x1xf32, #tpu.memory_space<vmem>>, vector<1x8x1xf32>,
    %25 = arith.mulf %18, %18 : vector<8x128xf32>
    %cst_21 = arith.constant dense<0.000000e+00> : vector<8xf32>
    %26 = vector.multi_reduction <add>, %25, %cst_21 [1] : vector<8x128xf32> to vector<8xf32>
    %27 = vector.shape_cast %26 : vector<8xf32> to vector<8x1xf32>
    %c0_22 = arith.constant 0 : index
    %c0_23 = arith.constant 0 : index
    %c0_24 = arith.constant 0 : index
    %28 = vector.load %arg6[%c0_22, %c0_23, %c0_24] : memref<1x8x1xf32, #tpu.memory_space<vmem>>, vector<1x8x1xf32>
    %29 = vector.shape_cast %28 : vector<1x8x1xf32> to vector<8x1xf32>
    %30 = vector.shape_cast %27 : vector<8x1xf32> to vector<1x8x1xf32>
    tpu.vector_store %arg6[%c0_22, %c0_23, %c0_24], %30 {strides = array<i32>} : memref<1x8x1xf32, #tpu.memory_space<vmem>>, vector<1x8x1xf32>,
    return
  }
  func.func @transform_0(%arg0: i32) -> (i32, i32, i32) {
    %c0_i32 = arith.constant 0 : i32
    %c0_i32_0 = arith.constant 0 : i32
    %c0_i32_1 = arith.constant 0 : i32
    return %c0_i32, %c0_i32_0, %arg0 : i32, i32, i32
  }
  func.func @transform_1(%arg0: i32) -> (i32, i32) {
    %c0_i32 = arith.constant 0 : i32
    %c0_i32_0 = arith.constant 0 : i32
    %c0_i32_1 = arith.constant 0 : i32
    return %c0_i32, %c0_i32_0 : i32, i32
  }
  func.func @transform_2(%arg0: i32) -> (i32, i32) {
    %c0_i32 = arith.constant 0 : i32
    %c0_i32_0 = arith.constant 0 : i32
    %c0_i32_1 = arith.constant 0 : i32
    return %c0_i32, %c0_i32_0 : i32, i32
  }
  func.func @transform_3(%arg0: i32) -> (i32, i32) {
    %c0_i32 = arith.constant 0 : i32
    %c0_i32_0 = arith.constant 0 : i32
    return %c0_i32, %arg0 : i32, i32
  }
  func.func @transform_4(%arg0: i32) -> (i32, i32, i32) {
    %c0_i32 = arith.constant 0 : i32
    %c0_i32_0 = arith.constant 0 : i32
    %c0_i32_1 = arith.constant 0 : i32
    return %arg0, %c0_i32, %c0_i32_0 : i32, i32, i32
  }
  func.func @transform_5(%arg0: i32) -> (i32, i32, i32) {
    %c0_i32 = arith.constant 0 : i32
    %c0_i32_0 = arith.constant 0 : i32
    %c0_i32_1 = arith.constant 0 : i32
    return %arg0, %c0_i32, %c0_i32_0 : i32, i32, i32
  }
}

</mosaic_0001>

<bundles_post_ra>
// kernel: basic_block_au.3
= control target key start
LH: loop header
LB: loop body
LE: loop exit
PB: predicated region body
PF: predicated region fallthrough
CT: control target
= control target key end

     0   :  { %v39_v0 = vmov 0   ;;  %s72_s1 = inlined_call_operand.vmem [shape: f32[8,1], index: 1, kind: input, shape index: {}]   ;;  %s73_s2 = inlined_call_operand.vmem [shape: f32[8,1], index: 2, kind: input, shape index: {}]   ;;  %s74_s0 = inlined_call_operand.vmem [shape: f32[8,128], index: 0, kind: input, shape index: {}, may-alias: {0,3}]   ;;  %s75_s3 = inlined_call_operand.vmem [shape: f32[8,128], index: 3, kind: output, shape index: {}, may-alias: {0,3}]  }
   0x1   :  { %38 = vset.pattern.permute.xlu0 %v39_v0  ;;  %v15_v1 = vld [vmem:[%s72_s1] sm:$0xff] }
   0x2   :  { %18 = vperm.xlu0 %38, %v15_v1   ;;  %v22_v2 = vld [vmem:[%s73_s2] sm:$0xff] }
   0x3   :  { %v14_v4 = vld [vmem:[%s74_s0] sm:$0xff] }
   0xa   :  { %25 = vperm.xlu0 %38, %v22_v2  }
  0x74   :  { %v19_v3 = vpop.permute.xlu0 %18 }
  0x75   :  { %v21_v5 = vmul.f32 %v19_v3, %v14_v4 }
  0x7c   :  { %v26_v6 = vpop.permute.xlu0 %25 }
  0x7d   :  { %v28_v7 = vadd.f32 %v26_v6, %v21_v5 }
  0x7f   :  { %vm29_vm0 = vcmp.gt.f32.partialorder %v28_v7, 0.0  ;;  %v30_v8 = vmul.f32 0.2, %v28_v7 }
  0x81   :  { %v31_v9 = vsel %vm29_vm0, %v28_v7, %v30_v8 }
  0x82   :  { %32 = vst [vmem:[%s75_s3] sm:$0xff] %v31_v9 }

// kernel: basic_block_au.2
= control target key start
LH: loop header
LB: loop body
LE: loop exit
PB: predicated region body
PF: predicated region fallthrough
CT: control target
= control target key end

     0   :  { %vm23_vm0 = vcmask 1043456   ;;  %vm19_vm1 = vcmask 31744   ;;  %v166_v3 = vmov 0   ;;  %vm135_vm2 = vcmask 7168   ;;  %s232_s0 = inlined_call_operand.vmem [shape: f32[4,4,128], index: 0, kind: input, shape index: {}]   ;;  %s233_s1 = inlined_call_operand.vmem [shape: f32[8,4], index: 1, kind: input, shape index: {}]   ;;  %s234_s2 = inlined_call_operand.vmem [shape: f32[8,1], index: 2, kind: input, shape index: {}]   ;;  %s235_s3 = inlined_call_operand.vmem [shape: f32[8,128], index: 3, kind: output, shape index: {0}]   ;;  %s236_s4 = inlined_call_operand.vmem [shape: f32[1,8,1], index: 4, kind: output, shape index: {1}]   ;;  %s237_s5 = inlined_call_operand.vmem [shape: f32[1,8,1], index: 5, kind: output, shape index: {2}]  }
   0x1   :  { %v158_v0 = vld [vmem:[%s232_s0 + $0x8] sm:$0xf]  ;;  %v17_v1 = vld [vmem:[%s233_s1] sm:$0xff]  ;;  %v161_v2 = vld [vmem:[%s232_s0 + $0xc] sm:$0xf]  ;;  %165 = vset.pattern.permute.xlu0 %v166_v3 }
   0x2   :  { %159 = vmatpush.msk.msra.mxu2 %vm23_vm0, %v158_v0  ;;  %162 = vmatpush.msk.msra.mxu3 %vm23_vm0, %v161_v2  ;;  %v18_v4 = vld [vmem:[%s232_s0] sm:$0xf]  ;;  %v155_v5 = vld [vmem:[%s232_s0 + $0x4] sm:$0xf] }
   0x3   :  { %160 = vmatmul.msk.f32.vlgmr.msra.gmra.mxu2 %vm19_vm1, %v17_v1  ;;  %163 = vmatmul.msk.f32.vlgmr.msra.gmra.mxu3 %vm19_vm1, %v17_v1  ;;  %v125_v6 = vld [vmem:[%s234_s2] sm:$0xff] }
   0x4   :  { %153 = vmatpush.msk.msra.mxu0 %vm23_vm0, %v18_v4  ;;  %156 = vmatpush.msk.msra.mxu1 %vm23_vm0, %v155_v5 }
   0x5   :  { %154 = vmatmul.msk.f32.vlgmr.msra.gmra.mxu0 %vm19_vm1, %v17_v1  ;;  %157 = vmatmul.msk.f32.vlgmr.msra.gmra.mxu1 %vm19_vm1, %v17_v1 }
   0x6   :  { %128 = vperm.xlu0 %165, %v125_v6  }
  0x78   :  { %v129_v13 = vpop.permute.xlu0 %128 }
  0x82   :  { %v44_v7 = vpop.f32.mrf.mxu0  ;;  %v69_v8 = vpop.f32.mrf.mxu1 }
  0x83   :  { %v72_v9 = vmax.f32 %v44_v7, %v69_v8 }
  0x86   :  { %v95_v10 = vpop.f32.mrf.mxu2  ;;  %v121_v11 = vpop.f32.mrf.mxu3 }
  0x87   :  { %v98_v12 = vmax.f32 %v72_v9, %v95_v10 }
  0x89   :  { %v124_v14 = vmax.f32 %v98_v12, %v121_v11 }
  0x8b   :  { %v131_v15 = vadd.f32 %v129_v13, %v124_v14 }
  0x8d   :  { %132 = vst [vmem:[%s235_s3] sm:$0xff] %v131_v15  ;;  %133 = vadd.xlane.f32.xlu0 %v131_v15  ;;  %v137_v16 = vmul.f32 %v131_v15, %v131_v15 }
  0x8f   :  { %138 = vadd.xlane.f32.xlu1 %v137_v16 }
 0x100   :  { %v134_v17 = vpop.xlane.xlu0 %133 }
 0x101   :  { %136 = vst.msk [vmem:[%s236_s4] sm:$0xff] %vm135_vm2, %v134_v17 }
 0x102   :  { %v139_v18 = vpop.xlane.xlu1 %138 }
 0x103   :  { %140 = vst.msk [vmem:[%s237_s5] sm:$0xff] %vm135_vm2, %v139_v18 }

</bundles_post_ra>
